<compile_context>
chip_gen: v6e
topology: v6e:2x2x1
jax: 0.10.0
libtpu: 0.0.40
codegen_flags: <defaults>
</compile_context>

<pallas_src>
import functools

import numpy as np
import jax
import jax.numpy as jnp
from jax.experimental import pallas as pl
from jax.experimental.pallas import tpu as pltpu


# ----------------------------- fused Pallas kernel --------------------------

def _vae_fused_kernel(*refs, n_enc, n_dec, leak):
    """Whole VAE forward in one kernel invocation.

    Ref order (all VMEM):
      x_flat, eps,
      [enc_W, enc_b] * n_enc,
      W_mean_logvar, b_mean_logvar,          # heads merged: N = 2 * latent
      W_dec_linear, b_dec_linear,
      [dec_W, dec_b] * n_dec,
      mean_out, log_var_out, recon_flat_out
    """
    it = iter(refs)
    x_ref = next(it)
    eps_ref = next(it)
    enc = [(next(it), next(it)) for _ in range(n_enc)]
    w_mv_ref, b_mv_ref = next(it), next(it)
    w_dl_ref, b_dl_ref = next(it), next(it)
    dec = [(next(it), next(it)) for _ in range(n_dec)]
    mean_ref = next(it)
    logvar_ref = next(it)
    recon_ref = next(it)

    def dense(h, w_ref, b_ref, slope=None):
        y = jnp.dot(h, w_ref[...], preferred_element_type=jnp.float32)
        y = y + b_ref[...]
        if slope is not None:
            y = jnp.where(y >= 0.0, y, slope * y)   # LeakyReLU
        return y

    # ---- encoder: (Conv1d lowered to dense matmul) + LeakyReLU per layer ----
    h = x_ref[...]
    for w_ref, b_ref in enc:
        h = dense(h, w_ref, b_ref, slope=leak)

    # ---- merged latent heads + reparameterization (fused) ----
    latent = mean_ref.shape[-1]
    mv = dense(h, w_mv_ref, b_mv_ref)             # (B, 2*latent)
    mean = mv[:, :latent]
    log_var = mv[:, latent:]
    z = eps_ref[...] * jnp.exp(log_var * 0.5) + mean

    # ---- decoder: Linear -> Unflatten -> ConvTranspose1d chain ----
    d = dense(z, w_dl_ref, b_dl_ref)
    for li, (w_ref, b_ref) in enumerate(dec):
        last = li == n_dec - 1
        d = dense(d, w_ref, b_ref, slope=None if last else leak)

    mean_ref[...] = mean.astype(mean_ref.dtype)
    logvar_ref[...] = log_var.astype(logvar_ref.dtype)
    recon_ref[...] = d.astype(recon_ref.dtype)


def vae_forward_pallas(x_flat, eps, params, *, n_enc, n_dec, latent_dim,
                       recon_flat_dim, leak):
    """One fused pallas_call for the whole VAE forward."""
    B = x_flat.shape[0]
    vmem = pl.BlockSpec(memory_space=pltpu.MemorySpace.VMEM)
    kernel = functools.partial(_vae_fused_kernel, n_enc=n_enc, n_dec=n_dec,
                               leak=leak)
    mean, log_var, recon_flat = pl.pallas_call(
        kernel,
        out_shape=(
            jax.ShapeDtypeStruct((B, latent_dim), jnp.float32),
            jax.ShapeDtypeStruct((B, latent_dim), jnp.float32),
            jax.ShapeDtypeStruct((B, recon_flat_dim), jnp.float32),
        ),
        in_specs=[vmem] * (2 + len(params)),
        out_specs=(vmem, vmem, vmem),
    )(x_flat, eps, *params)
    return mean, log_var, recon_flat


# --------------- host-side conv -> dense-matmul construction ----------------

def conv1d_as_dense(w, b, L_in, stride):
    """PyTorch Conv1d (no padding) as a dense (C_in*L_in, C_out*L_out) matrix."""
    w = np.asarray(w, dtype=np.float32)
    b = np.asarray(b, dtype=np.float32)
    C_out, C_in, K = w.shape
    L_out = (L_in - K) // stride + 1
    M = np.zeros((C_in, L_in, C_out, L_out), dtype=np.float32)
    for lo in range(L_out):
        for k in range(K):
            M[:, lo * stride + k, :, lo] += w[:, :, k].T
    return M.reshape(C_in * L_in, C_out * L_out), np.repeat(b, L_out), L_out


def convtranspose1d_as_dense(w, b, L_in, stride, output_padding):
    """PyTorch ConvTranspose1d (no padding) as a dense matrix."""
    w = np.asarray(w, dtype=np.float32)
    b = np.asarray(b, dtype=np.float32)
    C_in, C_out, K = w.shape
    L_out = (L_in - 1) * stride + K + output_padding
    M = np.zeros((C_in, L_in, C_out, L_out), dtype=np.float32)
    for li in range(L_in):
        for k in range(K):
            M[:, li, :, li * stride + k] += w[:, :, k]
    return M.reshape(C_in * L_in, C_out * L_out), np.repeat(b, L_out), L_out


# --------------------------------- driver -----------------------------------

if __name__ == "__main__":
    B, C_IN, L = 2, 4, 16
    LATENT = 8
    LEAK = 0.05
    # (out_channels, kernel, stride)
    enc_layers = [(8, 4, 2), (16, 4, 2)]
    # (out_channels, kernel, stride, output_padding)
    dec_layers = [(8, 4, 2, 1), (4, 4, 2, 0)]

    key = jax.random.PRNGKey(0)
    keys = jax.random.split(key, 16)
    ki = iter(range(16))

    def init(shape, k):
        return 0.1 * jax.random.normal(keys[k], shape, dtype=jnp.float32)

    # ---- encoder params (PyTorch Conv1d weight layout (C_out, C_in, K)) ----
    enc_w, enc_b = [], []
    c_in = C_IN
    for (c_out, k_sz, _s) in enc_layers:
        enc_w.append(init((c_out, c_in, k_sz), next(ki)))
        enc_b.append(init((c_out,), next(ki)))
        c_in = c_out

    # encoder output spatial / channel dims
    enc_Ls = []
    l_cur = L
    for (_c, k_sz, s) in enc_layers:
        l_cur = (l_cur - k_sz) // s + 1
        enc_Ls.append(l_cur)
    encoder_output_dim = (enc_layers[-1][0], enc_Ls[-1])     # (16, 2)
    flat_dim = encoder_output_dim[0] * encoder_output_dim[1]

    # ---- latent heads (nn.Linear weight layout (out, in)) ----
    Wm = init((LATENT, flat_dim), next(ki)); bm = init((LATENT,), next(ki))
    Wv = init((LATENT, flat_dim), next(ki)); bv = init((LATENT,), next(ki))

    # ---- decoder params ----
    Wd = init((flat_dim, LATENT), next(ki)); bd = init((flat_dim,), next(ki))
    dec_w, dec_b = [], []
    c_in = encoder_output_dim[0]
    for (c_out, k_sz, _s, _op) in dec_layers:
        # PyTorch ConvTranspose1d weight layout (C_in, C_out, K)
        dec_w.append(init((c_in, c_out, k_sz), next(ki)))
        dec_b.append(init((c_out,), next(ki)))
        c_in = c_out

    # ---- host-side lowering: convs -> dense matmul operands (numpy) ----
    enc_mats = []
    l_cur = L
    for (c_out, k_sz, s), w, b in zip(enc_layers, enc_w, enc_b):
        M, bflat, l_cur = conv1d_as_dense(w, b, l_cur, s)
        enc_mats.append((M, bflat))

    dec_mats = []
    l_cur = encoder_output_dim[1]
    for (c_out, k_sz, s, op), w, b in zip(dec_layers, dec_w, dec_b):
        M, bflat, l_cur = convtranspose1d_as_dense(w, b, l_cur, s, op)
        dec_mats.append((M, bflat))
    L_recon = l_cur
    C_recon = dec_layers[-1][0]

    # Merge mean / log_var heads into one (flat_dim, 2*LATENT) matmul; hoist
    # all transposes to the host.
    W_mv = np.concatenate([np.asarray(Wm).T, np.asarray(Wv).T], axis=1)
    b_mv = np.concatenate([np.asarray(bm), np.asarray(bv)])
    W_dl = np.asarray(Wd).T
    b_dl = np.asarray(bd)

    # Flat param list (weights + biases as (1, N) rows) for the fused kernel.
    params = []
    for (M, bflat) in enc_mats:
        params += [jnp.asarray(M), jnp.asarray(bflat).reshape(1, -1)]
    params += [jnp.asarray(W_mv), jnp.asarray(b_mv).reshape(1, -1)]
    params += [jnp.asarray(W_dl), jnp.asarray(b_dl).reshape(1, -1)]
    for (M, bflat) in dec_mats:
        params += [jnp.asarray(M), jnp.asarray(bflat).reshape(1, -1)]

    fwd = jax.jit(functools.partial(
        vae_forward_pallas,
        n_enc=len(enc_mats), n_dec=len(dec_mats),
        latent_dim=LATENT, recon_flat_dim=C_recon * L_recon, leak=LEAK))

    x = jax.random.normal(jax.random.PRNGKey(1), (B, C_IN, L), dtype=jnp.float32)
    eps = jax.random.normal(jax.random.PRNGKey(2), (B, LATENT), dtype=jnp.float32)

    mean, log_var, recon_flat = fwd(x.reshape(B, C_IN * L), eps, params)
    recon = recon_flat.reshape(B, C_recon, L_recon)
    jax.block_until_ready((mean, log_var, recon))

    assert mean.shape == (B, LATENT)
    assert log_var.shape == (B, LATENT)
    assert recon.shape == (B, C_IN, L)
    assert bool(jnp.all(jnp.isfinite(mean)))
    assert bool(jnp.all(jnp.isfinite(log_var)))
    assert bool(jnp.all(jnp.isfinite(recon)))
    print("KERNEL_OK")
</pallas_src>

<mosaic_0001>
module attributes {stable_mosaic.version = 11 : i64} {
  func.func @_vae_fused_kernel(%arg0: memref<2x64xf32, #tpu.memory_space<vmem>>, %arg1: memref<2x8xf32, #tpu.memory_space<vmem>>, %arg2: memref<64x56xf32, #tpu.memory_space<vmem>>, %arg3: memref<1x56xf32, #tpu.memory_space<vmem>>, %arg4: memref<56x32xf32, #tpu.memory_space<vmem>>, %arg5: memref<1x32xf32, #tpu.memory_space<vmem>>, %arg6: memref<32x16xf32, #tpu.memory_space<vmem>>, %arg7: memref<1x16xf32, #tpu.memory_space<vmem>>, %arg8: memref<8x32xf32, #tpu.memory_space<vmem>>, %arg9: memref<1x32xf32, #tpu.memory_space<vmem>>, %arg10: memref<32x56xf32, #tpu.memory_space<vmem>>, %arg11: memref<1x56xf32, #tpu.memory_space<vmem>>, %arg12: memref<56x64xf32, #tpu.memory_space<vmem>>, %arg13: memref<1x64xf32, #tpu.memory_space<vmem>>, %arg14: memref<2x8xf32, #tpu.memory_space<vmem>>, %arg15: memref<2x8xf32, #tpu.memory_space<vmem>>, %arg16: memref<2x64xf32, #tpu.memory_space<vmem>>) attributes {dimension_semantics = [], scalar_prefetch = 0 : i64, scratch_operands = 0 : i64, tpu.core_type = #tpu.core_type<tc>} {
    %c0 = arith.constant 0 : index
    %c0_0 = arith.constant 0 : index
    %0 = vector.load %arg0[%c0, %c0_0] : memref<2x64xf32, #tpu.memory_space<vmem>>, vector<2x64xf32>
    %c0_1 = arith.constant 0 : index
    %c0_2 = arith.constant 0 : index
    %1 = vector.load %arg2[%c0_1, %c0_2] : memref<64x56xf32, #tpu.memory_space<vmem>>, vector<64x56xf32>
    %cst = arith.constant dense<0.000000e+00> : vector<2x56xf32>
    %2 = tpu.matmul %0, %1, %cst {dimension_numbers = #tpu.dot_dimension_numbers<[1], [0], [0], [1], [0, 0, 1, 1], [], []>} : vector<2x64xf32>, vector<64x56xf32>, vector<2x56xf32> -> vector<2x56xf32>
    %c0_3 = arith.constant 0 : index
    %c0_4 = arith.constant 0 : index
    %3 = vector.load %arg3[%c0_3, %c0_4] : memref<1x56xf32, #tpu.memory_space<vmem>>, vector<1x56xf32>
    %4 = vector.broadcast %3 : vector<1x56xf32> to vector<2x56xf32>
    %5 = arith.addf %2, %4 : vector<2x56xf32>
    %cst_5 = arith.constant 0.000000e+00 : f32
    %6 = vector.broadcast %cst_5 : f32 to vector<2x56xf32>
    %7 = arith.cmpf oge, %5, %6 : vector<2x56xf32>
    %cst_6 = arith.constant 5.000000e-02 : f32
    %8 = vector.broadcast %cst_6 : f32 to vector<2x56xf32>
    %9 = arith.mulf %8, %5 : vector<2x56xf32>
    %10 = arith.select %7, %5, %9 : vector<2x56xi1>, vector<2x56xf32>
    %c0_7 = arith.constant 0 : index
    %c0_8 = arith.constant 0 : index
    %11 = vector.load %arg4[%c0_7, %c0_8] : memref<56x32xf32, #tpu.memory_space<vmem>>, vector<56x32xf32>
    %cst_9 = arith.constant dense<0.000000e+00> : vector<2x32xf32>
    %12 = tpu.matmul %10, %11, %cst_9 {dimension_numbers = #tpu.dot_dimension_numbers<[1], [0], [0], [1], [0, 0, 1, 1], [], []>} : vector<2x56xf32>, vector<56x32xf32>, vector<2x32xf32> -> vector<2x32xf32>
    %c0_10 = arith.constant 0 : index
    %c0_11 = arith.constant 0 : index
    %13 = vector.load %arg5[%c0_10, %c0_11] : memref<1x32xf32, #tpu.memory_space<vmem>>, vector<1x32xf32>
    %14 = vector.broadcast %13 : vector<1x32xf32> to vector<2x32xf32>
    %15 = arith.addf %12, %14 : vector<2x32xf32>
    %cst_12 = arith.constant 0.000000e+00 : f32
    %16 = vector.broadcast %cst_12 : f32 to vector<2x32xf32>
    %17 = arith.cmpf oge, %15, %16 : vector<2x32xf32>
    %cst_13 = arith.constant 5.000000e-02 : f32
    %18 = vector.broadcast %cst_13 : f32 to vector<2x32xf32>
    %19 = arith.mulf %18, %15 : vector<2x32xf32>
    %20 = arith.select %17, %15, %19 : vector<2x32xi1>, vector<2x32xf32>
    %c0_14 = arith.constant 0 : index
    %c0_15 = arith.constant 0 : index
    %21 = vector.load %arg6[%c0_14, %c0_15] : memref<32x16xf32, #tpu.memory_space<vmem>>, vector<32x16xf32>
    %cst_16 = arith.constant dense<0.000000e+00> : vector<2x16xf32>
    %22 = tpu.matmul %20, %21, %cst_16 {dimension_numbers = #tpu.dot_dimension_numbers<[1], [0], [0], [1], [0, 0, 1, 1], [], []>} : vector<2x32xf32>, vector<32x16xf32>, vector<2x16xf32> -> vector<2x16xf32>
    %c0_17 = arith.constant 0 : index
    %c0_18 = arith.constant 0 : index
    %23 = vector.load %arg7[%c0_17, %c0_18] : memref<1x16xf32, #tpu.memory_space<vmem>>, vector<1x16xf32>
    %24 = vector.broadcast %23 : vector<1x16xf32> to vector<2x16xf32>
    %25 = arith.addf %22, %24 : vector<2x16xf32>
    %26 = vector.extract_strided_slice %25 {offsets = [0, 0], sizes = [2, 8], strides = [1, 1]} : vector<2x16xf32> to vector<2x8xf32>
    %27 = vector.extract_strided_slice %25 {offsets = [0, 8], sizes = [2, 8], strides = [1, 1]} : vector<2x16xf32> to vector<2x8xf32>
    %c0_19 = arith.constant 0 : index
    %c0_20 = arith.constant 0 : index
    %28 = vector.load %arg1[%c0_19, %c0_20] : memref<2x8xf32, #tpu.memory_space<vmem>>, vector<2x8xf32>
    %cst_21 = arith.constant 5.000000e-01 : f32
    %29 = vector.broadcast %cst_21 : f32 to vector<2x8xf32>
    %30 = arith.mulf %27, %29 : vector<2x8xf32>
    %31 = math.exp %30 : vector<2x8xf32>
    %32 = arith.mulf %28, %31 : vector<2x8xf32>
    %33 = arith.addf %32, %26 : vector<2x8xf32>
    %c0_22 = arith.constant 0 : index
    %c0_23 = arith.constant 0 : index
    %34 = vector.load %arg8[%c0_22, %c0_23] : memref<8x32xf32, #tpu.memory_space<vmem>>, vector<8x32xf32>
    %cst_24 = arith.constant dense<0.000000e+00> : vector<2x32xf32>
    %35 = tpu.matmul %33, %34, %cst_24 {dimension_numbers = #tpu.dot_dimension_numbers<[1], [0], [0], [1], [0, 0, 1, 1], [], []>} : vector<2x8xf32>, vector<8x32xf32>, vector<2x32xf32> -> vector<2x32xf32>
    %c0_25 = arith.constant 0 : index
    %c0_26 = arith.constant 0 : index
    %36 = vector.load %arg9[%c0_25, %c0_26] : memref<1x32xf32, #tpu.memory_space<vmem>>, vector<1x32xf32>
    %37 = vector.broadcast %36 : vector<1x32xf32> to vector<2x32xf32>
    %38 = arith.addf %35, %37 : vector<2x32xf32>
    %c0_27 = arith.constant 0 : index
    %c0_28 = arith.constant 0 : index
    %39 = vector.load %arg10[%c0_27, %c0_28] : memref<32x56xf32, #tpu.memory_space<vmem>>, vector<32x56xf32>
    %cst_29 = arith.constant dense<0.000000e+00> : vector<2x56xf32>
    %40 = tpu.matmul %38, %39, %cst_29 {dimension_numbers = #tpu.dot_dimension_numbers<[1], [0], [0], [1], [0, 0, 1, 1], [], []>} : vector<2x32xf32>, vector<32x56xf32>, vector<2x56xf32> -> vector<2x56xf32>
    %c0_30 = arith.constant 0 : index
    %c0_31 = arith.constant 0 : index
    %41 = vector.load %arg11[%c0_30, %c0_31] : memref<1x56xf32, #tpu.memory_space<vmem>>, vector<1x56xf32>
    %42 = vector.broadcast %41 : vector<1x56xf32> to vector<2x56xf32>
    %43 = arith.addf %40, %42 : vector<2x56xf32>
    %cst_32 = arith.constant 0.000000e+00 : f32
    %44 = vector.broadcast %cst_32 : f32 to vector<2x56xf32>
    %45 = arith.cmpf oge, %43, %44 : vector<2x56xf32>
    %cst_33 = arith.constant 5.000000e-02 : f32
    %46 = vector.broadcast %cst_33 : f32 to vector<2x56xf32>
    %47 = arith.mulf %46, %43 : vector<2x56xf32>
    %48 = arith.select %45, %43, %47 : vector<2x56xi1>, vector<2x56xf32>
    %c0_34 = arith.constant 0 : index
    %c0_35 = arith.constant 0 : index
    %49 = vector.load %arg12[%c0_34, %c0_35] : memref<56x64xf32, #tpu.memory_space<vmem>>, vector<56x64xf32>
    %cst_36 = arith.constant dense<0.000000e+00> : vector<2x64xf32>
    %50 = tpu.matmul %48, %49, %cst_36 {dimension_numbers = #tpu.dot_dimension_numbers<[1], [0], [0], [1], [0, 0, 1, 1], [], []>} : vector<2x56xf32>, vector<56x64xf32>, vector<2x64xf32> -> vector<2x64xf32>
    %c0_37 = arith.constant 0 : index
    %c0_38 = arith.constant 0 : index
    %51 = vector.load %arg13[%c0_37, %c0_38] : memref<1x64xf32, #tpu.memory_space<vmem>>, vector<1x64xf32>
    %52 = vector.broadcast %51 : vector<1x64xf32> to vector<2x64xf32>
    %53 = arith.addf %50, %52 : vector<2x64xf32>
    %c0_39 = arith.constant 0 : index
    %c0_40 = arith.constant 0 : index
    %54 = vector.load %arg14[%c0_39, %c0_40] : memref<2x8xf32, #tpu.memory_space<vmem>>, vector<2x8xf32>
    tpu.vector_store %arg14[%c0_39, %c0_40], %26 {strides = array<i32>} : memref<2x8xf32, #tpu.memory_space<vmem>>, vector<2x8xf32>,
    %c0_41 = arith.constant 0 : index
    %c0_42 = arith.constant 0 : index
    %55 = vector.load %arg15[%c0_41, %c0_42] : memref<2x8xf32, #tpu.memory_space<vmem>>, vector<2x8xf32>
    tpu.vector_store %arg15[%c0_41, %c0_42], %27 {strides = array<i32>} : memref<2x8xf32, #tpu.memory_space<vmem>>, vector<2x8xf32>,
    %c0_43 = arith.constant 0 : index
    %c0_44 = arith.constant 0 : index
    %56 = vector.load %arg16[%c0_43, %c0_44] : memref<2x64xf32, #tpu.memory_space<vmem>>, vector<2x64xf32>
    tpu.vector_store %arg16[%c0_43, %c0_44], %53 {strides = array<i32>} : memref<2x64xf32, #tpu.memory_space<vmem>>, vector<2x64xf32>,
    return
  }
}

</mosaic_0001>

<bundles_post_ra>
// kernel: vae_forward_pallas.1
= control target key start
LH: loop header
LB: loop body
LE: loop exit
PB: predicated region body
PF: predicated region fallthrough
CT: control target
= control target key end

     0   :  { %s1104_s0 = inlined_call_operand.vmem [shape: f32[2,64], index: 0, kind: input, shape index: {}]   ;;  %s1105_s1 = inlined_call_operand.vmem [shape: f32[2,8], index: 1, kind: input, shape index: {}]   ;;  %s1106_s2 = inlined_call_operand.vmem [shape: f32[64,56], index: 2, kind: input, shape index: {}]   ;;  %s1107_s3 = inlined_call_operand.vmem [shape: f32[1,56], index: 3, kind: input, shape index: {}]   ;;  %s1108_s4 = inlined_call_operand.vmem [shape: f32[56,32], index: 4, kind: input, shape index: {}]   ;;  %s1109_s5 = inlined_call_operand.vmem [shape: f32[1,32], index: 5, kind: input, shape index: {}]   ;;  %s1110_s6 = inlined_call_operand.vmem [shape: f32[32,16], index: 6, kind: input, shape index: {}]   ;;  %s1111_s7 = inlined_call_operand.vmem [shape: f32[1,16], index: 7, kind: input, shape index: {}]   ;;  %s1112_s8 = inlined_call_operand.vmem [shape: f32[8,32], index: 8, kind: input, shape index: {}]   ;;  %s1113_s9 = inlined_call_operand.vmem [shape: f32[1,32], index: 9, kind: input, shape index: {}]   ;;  %s1114_s10 = inlined_call_operand.vmem [shape: f32[32,56], index: 10, kind: input, shape index: {}]   ;;  %s1115_s11 = inlined_call_operand.vmem [shape: f32[1,56], index: 11, kind: input, shape index: {}]   ;;  %s1116_s12 = inlined_call_operand.vmem [shape: f32[56,64], index: 12, kind: input, shape index: {}]   ;;  %s1117_s13 = inlined_call_operand.vmem [shape: f32[1,64], index: 13, kind: input, shape index: {}]   ;;  %s1118_s14 = inlined_call_operand.hbm [shape: f32[2,8], index: 14, kind: output, shape index: {0}]   ;;  %s1119_s15 = inlined_call_operand.hbm [shape: f32[2,8], index: 15, kind: output, shape index: {1}]   ;;  %s1120_s16 = inlined_call_operand.hbm [shape: f32[2,64], index: 16, kind: output, shape index: {2}]  }
   0x1   :  { %1121 = sst [smem:[#allocation9_spill]] %s1104_s0 }
   0x2   :  { %22 = vsyncpa [#allocation3], 0  ;;  %v60_v0 = vld [vmem:[%s1106_s2 + $0x38] sm:$0xff]  ;;  %v838_v1 = vmov 0.0   ;;  %v59_v2 = vld [vmem:[%s1106_s2 + $0x30] sm:$0xff]  ;;  %vm839_vm0 = vmmov 0  }
   0x3   :  { %686 = vmatprep.subr.mxu0 %v838_v1  ;;  %702 = vmatprep.mubr.msk.f32.mxu0 %vm839_vm0, %v838_v1  ;;  %v58_v3 = vld [vmem:[%s1106_s2 + $0x28] sm:$0xff]  ;;  %v151_v4 = vld [vmem:[%s1108_s4 + $0x30] sm:$0xff] }
   0x4   :  { %687 = vmatpush3.msra.mxu0 %v60_v0  ;;  %705 = vmatprep.subr.mxu1 %v838_v1  ;;  %v150_v5 = vld [vmem:[%s1108_s4 + $0x28] sm:$0xff] }
   0x5   :  { %688 = vmatprep.subr.mxu0 %v838_v1  ;;  %719 = vmatprep.mubr.msk.f32.mxu1 %vm839_vm0, %v838_v1 }
   0x6   :  { %689 = vmatpush3.msra.mxu0 %v59_v2  ;;  %706 = vmatpush3.msra.mxu1 %v151_v4 }
   0x7   :  { %23 = vsyncpa [#allocation5], 0  ;;  %690 = vmatprep.subr.mxu0 %v838_v1  ;;  %v57_v6 = vld [vmem:[%s1106_s2 + $0x20] sm:$0xff]  ;;  %707 = vmatprep.subr.mxu1 %v838_v1  ;;  %v56_v8 = vld [vmem:[%s1106_s2 + $0x18] sm:$0xff]  ;;  %s1122_s17 = sld [smem:[#allocation9_spill]]  ;;  %vm68_vm1 = vcmask 523264  }
   0x8   :  { %v149_v7 = vld [vmem:[%s1108_s4 + $0x20] sm:$0xff]  ;;  %691 = vmatpush3.msra.mxu0 %v58_v3  ;;  %708 = vmatpush3.msra.mxu1 %v150_v5  ;;  %v148_v9 = vld [vmem:[%s1108_s4 + $0x18] sm:$0xff]  ;;  %v55_v10 = vld [vmem:[%s1106_s2 + $0x10] sm:$0xff]  ;;  %vm159_vm3 = vcmask 457728   ;;  %vm247_vm5 = vcmask 261120   ;;  %vm587_vm6 = vcmask 58368  }
   0x9   :  { %692 = vmatprep.subr.mxu0 %v838_v1  ;;  %709 = vmatprep.subr.mxu1 %v838_v1  ;;  %v54_v11 = vld [vmem:[%s1106_s2 + $0x8] sm:$0xff]  ;;  %v53_v12 = vld [vmem:[%s1106_s2] sm:$0xff]  ;;  %v147_v14 = vld [vmem:[%s1108_s4 + $0x10] sm:$0xff]  ;;  %s840_s2 = smov 120   ;;  %vm339_vm7 = vcmask 64512   ;;  %s841_s22 = smov [#allocation4]  }
   0xa   :  { %693 = vmatpush3.msra.mxu0 %v57_v6  ;;  %710 = vmatpush3.msra.mxu1 %v149_v7  ;;  %v146_v15 = vld [vmem:[%s1108_s4 + $0x8] sm:$0xff]  ;;  %v145_v16 = vld [vmem:[%s1108_s4] sm:$0xff]  ;;  %v239_v22 = vld [vmem:[%s1110_s6 + $0x18] sm:$0xff]  ;;  %s842_s23 = smov [#allocation2]  }
   0xb   :  { %694 = vmatprep.subr.mxu0 %v838_v1  ;;  %711 = vmatprep.subr.mxu1 %v838_v1  ;;  %v637_v17 = vld [vmem:[%s1107_s3] ss:$0 sm:$0xff]  ;;  %v238_v24 = vld [vmem:[%s1110_s6 + $0x10] sm:$0xff]  ;;  %v237_v25 = vld [vmem:[%s1110_s6 + $0x8] sm:$0xff] }
   0xc   :  { %695 = vmatpush3.msra.mxu0 %v56_v8  ;;  %712 = vmatpush3.msra.mxu1 %v148_v9  ;;  %v236_v26 = vld [vmem:[%s1110_s6] sm:$0xff]  ;;  %v416_v45 = vld [vmem:[%s1114_s10 + $0x18] sm:$0xff]  ;;  %v415_v47 = vld [vmem:[%s1114_s10 + $0x10] sm:$0xff] }
   0xd   :  { %696 = vmatprep.subr.mxu0 %v838_v1  ;;  %713 = vmatprep.subr.mxu1 %v838_v1  ;;  %v52_v13 = vld [vmem:[%s1122_s17] sm:$0x3]  ;;  %v414_v48 = vld [vmem:[%s1114_s10 + $0x8] sm:$0xff]  ;;  %v506_v50 = vld [vmem:[%s1116_s12 + $0x30] sm:$0xff] }
   0xe   :  { %697 = vmatpush3.msra.mxu0 %v55_v10  ;;  %714 = vmatpush3.msra.mxu1 %v147_v14  ;;  %v639_v27 = vld [vmem:[%s1109_s5] ss:$0 sm:$0xff]  ;;  %v505_v51 = vld [vmem:[%s1116_s12 + $0x28] sm:$0xff]  ;;  %v503_v53 = vld [vmem:[%s1116_s12 + $0x18] sm:$0xff] }
   0xf   :  { %698 = vmatprep.subr.mxu0 %v838_v1  ;;  %715 = vmatprep.subr.mxu1 %v838_v1  ;;  %v641_v33 = vld [vmem:[%s1111_s7] ss:$0 sm:$0xff]  ;;  %v502_v58 = vld [vmem:[%s1116_s12 + $0x10] sm:$0xff]  ;;  %v501_v59 = vld [vmem:[%s1116_s12 + $0x8] sm:$0xff] }
  0x10   :  { %699 = vmatpush3.msra.mxu0 %v54_v11  ;;  %716 = vmatpush3.msra.mxu1 %v146_v15  ;;  %v331_v39 = vld [vmem:[%s1112_s8] sm:$0xff]  ;;  %s612_s8 = sshll.u32 %s841_s22, 4  ;;  %s613_s8 = int_to_ptr.vmem [resolvable:$true] %s612_s8 }
  0x11   :  { %700 = vmatprep.subr.mxu0 %v838_v1  ;;  %717 = vmatprep.subr.mxu1 %v838_v1  ;;  %v321_v41 = vld [vmem:[%s1105_s1] sm:$0x3]  ;;  %s602_s1 = sshll.u32 %s842_s23, 4  ;;  %s774_s24 = scalar_lea.vmem %s613_s8, 32  ;;  %s603_s1 = int_to_ptr.vmem [resolvable:$true] %s602_s1 }
  0x12   :  { %701 = vmatpush3.msra.mxu0 %v53_v12  ;;  %718 = vmatpush3.msra.mxu1 %v145_v16  ;;  %v413_v49 = vld [vmem:[%s1114_s10] sm:$0xff]  ;;  %p775_p0 = scmp.ne.s32.totalorder %s613_s8, %s774_s24  ;;  %p779_p1 = scmp.lt.s32.totalorder %s613_s8, %s613_s8 }
  0x13   :  { %703 = vmatmul.mubr.msk.f32.vlgmr.msra.gmra.mxu0 %vm68_vm1, %v52_v13  ;;  %733 = vmatprep.subr.mxu0 %v838_v1  ;;  %v504_v52 = vld [vmem:[%s1116_s12 + $0x20] sm:$0xff]  ;;  %p780_p2 = scmp.lt.s32.totalorder %s774_s24, %s774_s24 }
  0x14   :  { %735 = vmatprep.mubr.msk.f32.mxu0 %vm839_vm0, %v838_v1  ;;  %722 = vmatprep.subr.mxu1 %v838_v1  ;;  %v643_v54 = vld [vmem:[%s1113_s9] ss:$0 sm:$0xff] }
  0x15   :  { %734 = vmatpush3.msra.mxu0 %v331_v39  ;;  %v500_v60 = vld [vmem:[%s1116_s12] sm:$0xff]  ;;  %p781_p3 = por %p780_p2, %p779_p1 }
  0x16   :  { %738 = vmatprep.subr.mxu0 %v838_v1  ;;  %v645_v61 = vld [vmem:[%s1115_s11] ss:$0 sm:$0xff] }
  0x17   :  { %p782_p4 = pnand %p781_p3, %p775_p0 }
  0xd3   :  { %v138_v18 = vpop.f32.mrf.mxu0 }
  0xd4   :  { %v139_v19 = vadd.f32 %v637_v17, %v138_v18 }
  0xd5   :  { %v704_v20 = vpop.f32.mrf.mxu0 }
  0xd6   :  { %vm142_vm2 = vcmp.ge.f32.partialorder %v139_v19, 0.0  ;;  %v143_v21 = vmul.f32 0.05, %v139_v19 }
  0xd8   :  { %v144_v23 = vsel %vm142_vm2, %v139_v19, %v143_v21 }
  0xd9   :  { %720 = vmatmul.mubr.msk.f32.vlgmr.msra.gmra.mxu1 %vm159_vm3, %v144_v23 }
  0xda   :  { %723 = vmatpush3.msra.mxu1 %v239_v22  ;;  %730 = vmatprep.mubr.msk.f32.mxu1 %vm839_vm0, %v838_v1 }
  0xdb   :  { %724 = vmatprep.subr.mxu1 %v838_v1 }
  0xdc   :  { %725 = vmatpush3.msra.mxu1 %v238_v24 }
  0xdd   :  { %726 = vmatprep.subr.mxu1 %v838_v1 }
  0xde   :  { %727 = vmatpush3.msra.mxu1 %v237_v25 }
  0xdf   :  { %728 = vmatprep.subr.mxu1 %v838_v1 }
  0xe0   :  { %729 = vmatpush3.msra.mxu1 %v236_v26 }
  0xe1   :  { %749 = vmatprep.subr.mxu1 %v838_v1 }
 0x199   :  { %v229_v28 = vpop.f32.mrf.mxu1 }
 0x19a   :  { %v230_v29 = vadd.f32 %v639_v27, %v229_v28 }
 0x19b   :  { %v721_v30 = vpop.f32.mrf.mxu1 }
 0x19c   :  { %vm233_vm4 = vcmp.ge.f32.partialorder %v230_v29, 0.0  ;;  %v234_v31 = vmul.f32 0.05, %v230_v29 }
 0x19e   :  { %v235_v32 = vsel %vm233_vm4, %v230_v29, %v234_v31 }
 0x19f   :  { %731 = vmatmul.mubr.msk.f32.vlgmr.msra.gmra.mxu1 %vm247_vm5, %v235_v32 }
 0x1a0   :  { %763 = vmatprep.mubr.msk.f32.mxu1 %vm839_vm0, %v838_v1  ;;  %750 = vmatpush3.msra.mxu1 %v506_v50 }
 0x1a1   :  { %751 = vmatprep.subr.mxu1 %v838_v1 }
 0x1a2   :  { %752 = vmatpush3.msra.mxu1 %v505_v51 }
 0x1a3   :  { %753 = vmatprep.subr.mxu1 %v838_v1 }
 0x1a4   :  { %754 = vmatpush3.msra.mxu1 %v504_v52 }
 0x1a5   :  { %755 = vmatprep.subr.mxu1 %v838_v1 }
 0x1a6   :  { %756 = vmatpush3.msra.mxu1 %v503_v53 }
 0x1a7   :  { %757 = vmatprep.subr.mxu1 %v838_v1 }
 0x1a8   :  { %758 = vmatpush3.msra.mxu1 %v502_v58 }
 0x1a9   :  { %759 = vmatprep.subr.mxu1 %v838_v1 }
 0x1aa   :  { %760 = vmatpush3.msra.mxu1 %v501_v59 }
 0x1ab   :  { %761 = vmatprep.subr.mxu1 %v838_v1 }
 0x1ac   :  { %762 = vmatpush3.msra.mxu1 %v500_v60 }
 0x25f   :  { %v317_v34 = vpop.f32.mrf.mxu1 }
 0x260   :  { %v318_v35 = vadd.f32 %v641_v33, %v317_v34 }
 0x261   :  { %v732_v36 = vpop.f32.mrf.mxu1 }
 0x262   :  { %v322_v37 = vmul.f32 0.5, %v318_v35  ;;  %588 = vst.msk [vmem:[#allocation2] sm:$0x3] %vm587_vm6, %v318_v35 }
 0x264   :  { %v323_v38 = vmul.f32 1.442695, %v322_v37 }
 0x266   :  { %772 = vpow2.f32 %v323_v38 }
 0x273   :  { %v773_v40 = vpop.eup %772 }
 0x274   :  { %326 = vrot.lane.b32.xlu0 %v773_v40, %s840_s2 }
 0x278   :  { %590 = vrot.lane.b32.xlu0 %v318_v35, %s840_s2 }
 0x2e6   :  { %v327_v42 = vpop.permute.xlu0 %326 }
 0x2e7   :  { %v329_v43 = vmul.f32 %v327_v42, %v321_v41 }
 0x2e9   :  { %v330_v44 = vadd.f32 %v329_v43, %v318_v35 }
 0x2ea   :  { %v591_v46 = vpop.permute.xlu0 %590 }
 0x2eb   :  { %593 = vst.msk [vmem:[#allocation4] sm:$0x3] %vm587_vm6, %v591_v46  ;;  %736 = vmatmul.mubr.msk.f32.vlgmr.msra.gmra.mxu0 %vm339_vm7, %v330_v44 }
 0x2ec   :  { %739 = vmatpush3.msra.mxu0 %v416_v45  ;;  %746 = vmatprep.mubr.msk.f32.mxu0 %vm839_vm0, %v838_v1 }
 0x2ed   :  { %740 = vmatprep.subr.mxu0 %v838_v1 }
 0x2ee   :  { %741 = vmatpush3.msra.mxu0 %v415_v47 }
 0x2ef   :  { %742 = vmatprep.subr.mxu0 %v838_v1 }
 0x2f0   :  { %743 = vmatpush3.msra.mxu0 %v414_v48 }
 0x2f1   :  { %744 = vmatprep.subr.mxu0 %v838_v1 }
 0x2f2   :  { %745 = vmatpush3.msra.mxu0 %v413_v49 }
 0x3ab   :  { %v409_v55 = vpop.f32.mrf.mxu0 }
 0x3ac   :  { %v410_v56 = vadd.f32 %v643_v54, %v409_v55 }
 0x3ad   :  { %v737_v57 = vpop.f32.mrf.mxu0 }
 0x3ae   :  { %747 = vmatmul.mubr.msk.f32.vlgmr.msra.gmra.mxu0 %vm247_vm5, %v410_v56 }
 0x46e   :  { %v493_v62 = vpop.f32.mrf.mxu0 }
 0x46f   :  { %v494_v63 = vadd.f32 %v645_v61, %v493_v62 }
 0x470   :  { %v748_v0 = vpop.f32.mrf.mxu0 }
 0x471   :  { %vm497_vm8 = vcmp.ge.f32.partialorder %v494_v63, 0.0  ;;  %v498_v2 = vmul.f32 0.05, %v494_v63 }
 0x473   :  { %v499_v3 = vsel %vm497_vm8, %v494_v63, %v498_v2 }
 0x474   :  { %764 = vmatmul.mubr.msk.f32.vlgmr.msra.gmra.mxu1 %vm159_vm3, %v499_v3 }
 0x475   :  { %785 = shalt.err (!%p782_p4)
}
 0x476   :  { %615 = dma.vmem_to_hbm [thread:$0]  %s613_s8, 32, %s1119_s15, [#allocation5]  }
 0x477   :  { %s794_s25 = scalar_lea.vmem %s603_s1, 32  ;;  %p799_p6 = scmp.lt.s32.totalorder %s603_s1, %s603_s1 }
 0x478   :  { %p795_p5 = scmp.ne.s32.totalorder %s603_s1, %s794_s25  ;;  %p800_p7 = scmp.lt.s32.totalorder %s794_s25, %s794_s25 }
 0x47a   :  { %p801_p8 = por %p800_p7, %p799_p6 }
 0x47c   :  { %p802_p9 = pnand %p801_p8, %p795_p5 }
 0x47e   :  { %805 = shalt.err (!%p802_p9)
}
 0x47f   :  { %605 = dma.vmem_to_hbm [thread:$0]  %s603_s1, 32, %s1118_s14, [#allocation3]   ;;  %v647_v1 = vld [vmem:[%s1117_s13] ss:$0 sm:$0xff]  ;;  %vm594_vm9 = vcmask 517120  }
 0x480   :  { %s843_s28 = smov [#allocation6]  }
 0x481   :  { %s622_s29 = sshll.u32 %s843_s28, 4  ;;  %s623_s29 = int_to_ptr.vmem [resolvable:$true] %s622_s29 }
 0x482   :  { %s814_s15 = scalar_lea.vmem %s623_s29, 32  ;;  %p819_p11 = scmp.lt.s32.totalorder %s623_s29, %s623_s29 }
 0x483   :  { %p815_p10 = scmp.ne.s32.totalorder %s623_s29, %s814_s15  ;;  %p820_p12 = scmp.lt.s32.totalorder %s814_s15, %s814_s15 }
 0x485   :  { %p821_p13 = por %p820_p12, %p819_p11 }
 0x487   :  { %p822_p0 = pnand %p821_p13, %p815_p10 }
 0x534   :  { %v583_v4 = vpop.f32.mrf.mxu1 }
 0x535   :  { %v584_v5 = vadd.f32 %v647_v1, %v583_v4 }
 0x536   :  { %v765_v6 = vpop.f32.mrf.mxu1 }
 0x537   :  { %595 = vst.msk [vmem:[#allocation6] sm:$0x3] %vm594_vm9, %v584_v5 }
 0x538   :  { %825 = shalt.err (!%p822_p0)
}
 0x539   :  { %625 = dma.vmem_to_hbm [thread:$0]  %s623_s29, 32, %s1120_s16, [#allocation5]  }
 0x53a   :  { %834 = dma.done.wait [#allocation3], 32  }
 0x53b   :  { %835 = vsyncadd [#allocation3], 4294967264 }
 0x53c   :  { %836 = dma.done.wait [#allocation5], 64  }
 0x53d   :  { %837 = vsyncadd [#allocation5], 4294967232 }
 0x53e   :  { %635 = vsyncpa [#allocation3], 1 }
 0x53f   :  { %636 = vsyncpa [#allocation5], 1 }

</bundles_post_ra>
